<compile_context>
chip_gen: v5e
topology: v5e:2x2
jax: 0.10.0
libtpu: 0.0.40
codegen_flags: <defaults>
</compile_context>

<pallas_src>
import jax
import jax.numpy as jnp
from jax.experimental import pallas as pl
from jax.experimental.pallas import tpu as pltpu


def discrim_kernel(x_ref, w1_ref, b1_ref, w2_ref, b2_ref, w3_ref, b3_ref, o_ref):
    # Layer 1: Linear(readsize -> 256) + ReLU  (bf16 operands, f32 accumulate)
    h1 = jnp.dot(x_ref[...], w1_ref[...], preferred_element_type=jnp.float32)
    h1 = jnp.maximum(h1 + b1_ref[...], 0.0)                      # f32 elementwise

    # Layer 2: Linear(256 -> 256) + ReLU
    h2 = jnp.dot(h1.astype(w2_ref.dtype), w2_ref[...],
                 preferred_element_type=jnp.float32)
    h2 = jnp.maximum(h2 + b2_ref[...], 0.0)                      # f32 elementwise

    # Layer 3: Linear(256 -> 128 lane-padded, real output in column 0) + Sigmoid
    logits = jnp.dot(h2.astype(w3_ref.dtype), w3_ref[...],
                     preferred_element_type=jnp.float32) + b3_ref[...]
    # sigmoid(x) = 1 / (1 + exp(-x)); exp and reciprocal both route to the EUP.
    sig = pl.reciprocal(1.0 + jnp.exp(-logits), approx=True)
    o_ref[...] = sig.astype(o_ref.dtype)


def _round_up(n, m):
    return (n + m - 1) // m * m


def discrim_net(x, params, *, bm=256, compute_dtype=jnp.bfloat16):
    """x: (B, readsize) float32 -> (B, 1) float32 in [0, 1]."""
    w1, b1, w2, b2, w3, b3 = params
    B, D = x.shape
    H1 = w1.shape[1]
    H2 = w2.shape[1]
    LANE = 128

    # Lane-dense final layer: pad (H2,1)->(H2,128), (1,1)->(1,128) with zeros.
    w3p = jnp.zeros((H2, LANE), jnp.float32).at[:, :1].set(w3)
    b3p = jnp.zeros((1, LANE), jnp.float32).at[:, :1].set(b3)

    # Batch tiling: tile size is a multiple of 8 sublanes; pad B up to a
    # multiple of the tile so the grid divides evenly (extra rows sliced off).
    bm_eff = min(bm, _round_up(B, 8))
    B_pad = _round_up(B, bm_eff)
    if B_pad != B:
        x = jnp.pad(x, ((0, B_pad - B), (0, 0)))

    # bf16 operands for the MXU (also halves x/weight HBM traffic).
    xq = x.astype(compute_dtype)
    w1q = w1.astype(compute_dtype)
    w2q = w2.astype(compute_dtype)
    w3q = w3p.astype(compute_dtype)

    grid = (B_pad // bm_eff,)

    flops = 2 * B_pad * (D * H1 + H1 * H2 + H2 * LANE)
    bytes_accessed = (
        xq.size * 2 + w1q.size * 2 + w2q.size * 2 + w3q.size * 2
        + (b1.size + b2.size + b3p.size) * 4
        + B_pad * LANE * 4
    )

    out = pl.pallas_call(
        discrim_kernel,
        out_shape=jax.ShapeDtypeStruct((B_pad, LANE), jnp.float32),
        grid_spec=pltpu.PrefetchScalarGridSpec(
            num_scalar_prefetch=0,
            grid=grid,
            in_specs=[
                pl.BlockSpec((bm_eff, D), lambda i: (i, 0)),   # x tile over batch
                pl.BlockSpec((D, H1), lambda i: (0, 0)),       # w1 (full, resident)
                pl.BlockSpec((1, H1), lambda i: (0, 0)),       # b1
                pl.BlockSpec((H1, H2), lambda i: (0, 0)),      # w2
                pl.BlockSpec((1, H2), lambda i: (0, 0)),       # b2
                pl.BlockSpec((H2, LANE), lambda i: (0, 0)),    # w3 (lane-padded)
                pl.BlockSpec((1, LANE), lambda i: (0, 0)),     # b3 (lane-padded)
            ],
            out_specs=pl.BlockSpec((bm_eff, LANE), lambda i: (i, 0)),
        ),
        compiler_params=pltpu.CompilerParams(
            dimension_semantics=("parallel",),
        ),
        cost_estimate=pl.CostEstimate(
            flops=flops,
            transcendentals=B_pad * LANE,
            bytes_accessed=bytes_accessed,
        ),
    )(xq, w1q, b1, w2q, b2, w3q, b3p)

    # Strip batch padding and the 127 dummy lanes.
    return out[:B, :1]


def init_params(key, readsize=512):
    """Deterministic synthetic init matching DiscrimNet's layer shapes.

    Stored as (in_features, out_features) so the kernel computes y = x @ W + b
    (equivalent to PyTorch's x @ W.T + b with W of shape (out, in)).
    """
    k1, k2, k3 = jax.random.split(key, 3)
    w1 = jax.random.normal(k1, (readsize, 256), jnp.float32) * (1.0 / jnp.sqrt(readsize))
    b1 = jnp.zeros((1, 256), jnp.float32)
    w2 = jax.random.normal(k2, (256, 256), jnp.float32) * (1.0 / jnp.sqrt(256.0))
    b2 = jnp.zeros((1, 256), jnp.float32)
    w3 = jax.random.normal(k3, (256, 1), jnp.float32) * (1.0 / jnp.sqrt(256.0))
    b3 = jnp.zeros((1, 1), jnp.float32)
    return (w1, b1, w2, b2, w3, b3)


def discrim_net_ref(x, params, compute_dtype=jnp.bfloat16):
    """Pure-JAX reference using the same bf16-operand / f32-accumulate math."""
    w1, b1, w2, b2, w3, b3 = params
    h = jnp.dot(x.astype(compute_dtype), w1.astype(compute_dtype),
                preferred_element_type=jnp.float32)
    h = jnp.maximum(h + b1, 0.0)
    h = jnp.dot(h.astype(compute_dtype), w2.astype(compute_dtype),
                preferred_element_type=jnp.float32)
    h = jnp.maximum(h + b2, 0.0)
    logits = jnp.dot(h.astype(compute_dtype), w3.astype(compute_dtype),
                     preferred_element_type=jnp.float32) + b3
    return jax.nn.sigmoid(logits)


if __name__ == "__main__":
    readsize = 512
    key = jax.random.PRNGKey(0)
    kx, kp = jax.random.split(key)
    params = init_params(kp, readsize)

    for B in (8, 12):  # 12 exercises the batch-padding path
        x = jax.random.normal(jax.random.fold_in(kx, B), (B, readsize), jnp.float32)

        out = discrim_net(x, params)
        out = jax.block_until_ready(out)

        ref = discrim_net_ref(x, params)
        assert out.shape == (B, 1), out.shape
        assert bool(jnp.all((out >= 0.0) & (out <= 1.0)))
        assert jnp.allclose(out, ref, atol=5e-3, rtol=5e-3), "mismatch vs reference"

    print("KERNEL_OK")
</pallas_src>

<mosaic_0001>
module attributes {stable_mosaic.version = 11 : i64} {
  func.func @discrim_kernel(%arg0: i32, %arg1: memref<8x512xbf16, #tpu.memory_space<vmem>>, %arg2: memref<512x256xbf16, #tpu.memory_space<vmem>>, %arg3: memref<1x256xf32, #tpu.memory_space<vmem>>, %arg4: memref<256x256xbf16, #tpu.memory_space<vmem>>, %arg5: memref<1x256xf32, #tpu.memory_space<vmem>>, %arg6: memref<256x128xbf16, #tpu.memory_space<vmem>>, %arg7: memref<1x128xf32, #tpu.memory_space<vmem>>, %arg8: memref<8x128xf32, #tpu.memory_space<vmem>>) attributes {dimension_semantics = [#tpu.dimension_semantics<parallel>], iteration_bounds = array<i64: 1>, scalar_prefetch = 0 : i64, scratch_operands = 0 : i64, tpu.core_type = #tpu.core_type<tc>, window_params = [{transform_indices = @transform_0, window_bounds = array<i64: 8, 512>}, {pipeline_mode = #tpu.pipeline_mode<synchronous>, transform_indices = @transform_1, window_bounds = array<i64: 512, 256>}, {pipeline_mode = #tpu.pipeline_mode<synchronous>, transform_indices = @transform_2, window_bounds = array<i64: 1, 256>}, {pipeline_mode = #tpu.pipeline_mode<synchronous>, transform_indices = @transform_3, window_bounds = array<i64: 256, 256>}, {pipeline_mode = #tpu.pipeline_mode<synchronous>, transform_indices = @transform_4, window_bounds = array<i64: 1, 256>}, {pipeline_mode = #tpu.pipeline_mode<synchronous>, transform_indices = @transform_5, window_bounds = array<i64: 256, 128>}, {pipeline_mode = #tpu.pipeline_mode<synchronous>, transform_indices = @transform_6, window_bounds = array<i64: 1, 128>}, {transform_indices = @transform_7, window_bounds = array<i64: 8, 128>}]} {
    %c0 = arith.constant 0 : index
    %c0_0 = arith.constant 0 : index
    %0 = vector.load %arg1[%c0, %c0_0] : memref<8x512xbf16, #tpu.memory_space<vmem>>, vector<8x512xbf16>
    %c0_1 = arith.constant 0 : index
    %c0_2 = arith.constant 0 : index
    %1 = vector.load %arg2[%c0_1, %c0_2] : memref<512x256xbf16, #tpu.memory_space<vmem>>, vector<512x256xbf16>
    %cst = arith.constant dense<0.000000e+00> : vector<8x256xf32>
    %2 = tpu.matmul %0, %1, %cst {dimension_numbers = #tpu.dot_dimension_numbers<[1], [0], [0], [1], [0, 0, 1, 1], [], []>} : vector<8x512xbf16>, vector<512x256xbf16>, vector<8x256xf32> -> vector<8x256xf32>
    %c0_3 = arith.constant 0 : index
    %c0_4 = arith.constant 0 : index
    %3 = vector.load %arg3[%c0_3, %c0_4] : memref<1x256xf32, #tpu.memory_space<vmem>>, vector<1x256xf32>
    %4 = vector.broadcast %3 : vector<1x256xf32> to vector<8x256xf32>
    %5 = arith.addf %2, %4 : vector<8x256xf32>
    %cst_5 = arith.constant 0.000000e+00 : f32
    %6 = vector.broadcast %cst_5 : f32 to vector<8x256xf32>
    %7 = arith.maximumf %5, %6 : vector<8x256xf32>
    %8 = arith.truncf %7 : vector<8x256xf32> to vector<8x256xbf16>
    %c0_6 = arith.constant 0 : index
    %c0_7 = arith.constant 0 : index
    %9 = vector.load %arg4[%c0_6, %c0_7] : memref<256x256xbf16, #tpu.memory_space<vmem>>, vector<256x256xbf16>
    %cst_8 = arith.constant dense<0.000000e+00> : vector<8x256xf32>
    %10 = tpu.matmul %8, %9, %cst_8 {dimension_numbers = #tpu.dot_dimension_numbers<[1], [0], [0], [1], [0, 0, 1, 1], [], []>} : vector<8x256xbf16>, vector<256x256xbf16>, vector<8x256xf32> -> vector<8x256xf32>
    %c0_9 = arith.constant 0 : index
    %c0_10 = arith.constant 0 : index
    %11 = vector.load %arg5[%c0_9, %c0_10] : memref<1x256xf32, #tpu.memory_space<vmem>>, vector<1x256xf32>
    %12 = vector.broadcast %11 : vector<1x256xf32> to vector<8x256xf32>
    %13 = arith.addf %10, %12 : vector<8x256xf32>
    %cst_11 = arith.constant 0.000000e+00 : f32
    %14 = vector.broadcast %cst_11 : f32 to vector<8x256xf32>
    %15 = arith.maximumf %13, %14 : vector<8x256xf32>
    %16 = arith.truncf %15 : vector<8x256xf32> to vector<8x256xbf16>
    %c0_12 = arith.constant 0 : index
    %c0_13 = arith.constant 0 : index
    %17 = vector.load %arg6[%c0_12, %c0_13] : memref<256x128xbf16, #tpu.memory_space<vmem>>, vector<256x128xbf16>
    %cst_14 = arith.constant dense<0.000000e+00> : vector<8x128xf32>
    %18 = tpu.matmul %16, %17, %cst_14 {dimension_numbers = #tpu.dot_dimension_numbers<[1], [0], [0], [1], [0, 0, 1, 1], [], []>} : vector<8x256xbf16>, vector<256x128xbf16>, vector<8x128xf32> -> vector<8x128xf32>
    %c0_15 = arith.constant 0 : index
    %c0_16 = arith.constant 0 : index
    %19 = vector.load %arg7[%c0_15, %c0_16] : memref<1x128xf32, #tpu.memory_space<vmem>>, vector<1x128xf32>
    %20 = vector.broadcast %19 : vector<1x128xf32> to vector<8x128xf32>
    %21 = arith.addf %18, %20 : vector<8x128xf32>
    %cst_17 = arith.constant 0.000000e+00 : f32
    %22 = vector.broadcast %cst_17 : f32 to vector<8x128xf32>
    %23 = arith.subf %22, %21 : vector<8x128xf32>
    %24 = math.exp %23 : vector<8x128xf32>
    %cst_18 = arith.constant 1.000000e+00 : f32
    %25 = vector.broadcast %cst_18 : f32 to vector<8x128xf32>
    %26 = arith.addf %25, %24 : vector<8x128xf32>
    %27 = tpu.reciprocal %26 {approx = true} : vector<8x128xf32> -> vector<8x128xf32>
    %c0_19 = arith.constant 0 : index
    %c0_20 = arith.constant 0 : index
    %28 = vector.load %arg8[%c0_19, %c0_20] : memref<8x128xf32, #tpu.memory_space<vmem>>, vector<8x128xf32>
    tpu.vector_store %arg8[%c0_19, %c0_20], %27 {strides = array<i32>} : memref<8x128xf32, #tpu.memory_space<vmem>>, vector<8x128xf32>,
    return
  }
  func.func @transform_0(%arg0: i32) -> (i32, i32) {
    %c0_i32 = arith.constant 0 : i32
    %c0_i32_0 = arith.constant 0 : i32
    return %arg0, %c0_i32 : i32, i32
  }
  func.func @transform_1(%arg0: i32) -> (i32, i32) {
    %c0_i32 = arith.constant 0 : i32
    %c0_i32_0 = arith.constant 0 : i32
    %c0_i32_1 = arith.constant 0 : i32
    return %c0_i32, %c0_i32_0 : i32, i32
  }
  func.func @transform_2(%arg0: i32) -> (i32, i32) {
    %c0_i32 = arith.constant 0 : i32
    %c0_i32_0 = arith.constant 0 : i32
    %c0_i32_1 = arith.constant 0 : i32
    return %c0_i32, %c0_i32_0 : i32, i32
  }
  func.func @transform_3(%arg0: i32) -> (i32, i32) {
    %c0_i32 = arith.constant 0 : i32
    %c0_i32_0 = arith.constant 0 : i32
    %c0_i32_1 = arith.constant 0 : i32
    return %c0_i32, %c0_i32_0 : i32, i32
  }
  func.func @transform_4(%arg0: i32) -> (i32, i32) {
    %c0_i32 = arith.constant 0 : i32
    %c0_i32_0 = arith.constant 0 : i32
    %c0_i32_1 = arith.constant 0 : i32
    return %c0_i32, %c0_i32_0 : i32, i32
  }
  func.func @transform_5(%arg0: i32) -> (i32, i32) {
    %c0_i32 = arith.constant 0 : i32
    %c0_i32_0 = arith.constant 0 : i32
    %c0_i32_1 = arith.constant 0 : i32
    return %c0_i32, %c0_i32_0 : i32, i32
  }
  func.func @transform_6(%arg0: i32) -> (i32, i32) {
    %c0_i32 = arith.constant 0 : i32
    %c0_i32_0 = arith.constant 0 : i32
    %c0_i32_1 = arith.constant 0 : i32
    return %c0_i32, %c0_i32_0 : i32, i32
  }
  func.func @transform_7(%arg0: i32) -> (i32, i32) {
    %c0_i32 = arith.constant 0 : i32
    %c0_i32_0 = arith.constant 0 : i32
    return %arg0, %c0_i32 : i32, i32
  }
}

</mosaic_0001>

<bundles_post_ra>
// kernel: tpu_custom_call.1
= control target key start
LH: loop header
LB: loop body
LE: loop exit
PB: predicated region body
PF: predicated region fallthrough
CT: control target
= control target key end

     0   :  { %12 = vsyncpa [#allocation3], 0  ;;  %s1869_s0 = inlined_call_operand.hbm [shape: bf16[8,512], index: 0, kind: input, shape index: {}]   ;;  %s1870_s1 = inlined_call_operand.hbm [shape: bf16[512,256], index: 1, kind: input, shape index: {}]   ;;  %s1871_s2 = inlined_call_operand.hbm [shape: f32[1,256], index: 2, kind: input, shape index: {}]   ;;  %s1872_s3 = inlined_call_operand.hbm [shape: bf16[256,256], index: 3, kind: input, shape index: {}]   ;;  %s1873_s4 = inlined_call_operand.vmem [shape: f32[1,256], index: 4, kind: input, shape index: {}]   ;;  %s1874_s5 = inlined_call_operand.hbm [shape: bf16[256,128], index: 5, kind: input, shape index: {}]   ;;  %s1875_s6 = inlined_call_operand.vmem [shape: f32[1,128], index: 6, kind: input, shape index: {}]   ;;  %s1876_s7 = inlined_call_operand.hbm [shape: f32[8,128], index: 7, kind: output, shape index: {}]  }
   0x1   :  { %13 = vsyncpa [#allocation6], 0 }
   0x2   :  { %14 = vsyncpa [#allocation9], 0  ;;  %s31_s26 = sshll.u32 %s1870_s1, 4  ;;  %s32_s26 = int_to_ptr.hbm [resolvable:$true] %s31_s26 }
   0x3   :  { %15 = vsyncpa [#allocation4], 0  ;;  %s1779_s27 = smov [#allocation5]   ;;  %s55_s8 = sshll.u32 %s1872_s3, 4  ;;  %s56_s8 = int_to_ptr.hbm [resolvable:$true] %s55_s8 }
   0x4   :  { %s33_s28 = sshll.u32 %s1779_s27, 4  ;;  %s1780_s9 = smov 128   ;;  %s34_s28 = int_to_ptr.vmem [resolvable:$true] %s33_s28 }
   0x5   :  { %s1781_s10 = smov 8   ;;  %s1782_s11 = smov [#allocation8]  }
   0x6   :  { %39 = dma.hbm_to_vmem [thread:$0]  %s32_s26, 8192, %s34_s28, [#allocation6], %s1780_s9, %s1780_s9, %s1781_s10  }
   0x7   :  { %s57_s12 = sshll.u32 %s1782_s11, 4  ;;  %s21_s15 = sshll.u32 %s1869_s0, 4  ;;  %s58_s12 = int_to_ptr.vmem [resolvable:$true] %s57_s12  ;;  %s22_s15 = int_to_ptr.hbm [resolvable:$true] %s21_s15 }
   0x8   :  { %63 = dma.hbm_to_vmem [thread:$0]  %s56_s8, 4096, %s58_s12, [#allocation9], %s1780_s9, %s1780_s9, %s1781_s10  }
   0x9   :  { %s45_s17 = sshll.u32 %s1871_s2, 4  ;;  %s1783_s18 = smov [#allocation2]   ;;  %s46_s17 = int_to_ptr.hbm [resolvable:$true] %s45_s17 }
   0xa   :  { %s23_s19 = sshll.u32 %s1783_s18, 4  ;;  %s1784_s3 = smov [#allocation7]   ;;  %s24_s19 = int_to_ptr.vmem [resolvable:$true] %s23_s19 }
   0xb   :  { %26 = dma.hbm_to_vmem [thread:$0]  %s22_s15, 256, %s24_s19, [#allocation3]  }
   0xc   :  { %s47_s20 = sshll.u32 %s1784_s3, 4  ;;  %s70_s23 = sshll.u32 %s1874_s5, 4  ;;  %s48_s20 = int_to_ptr.vmem [resolvable:$true] %s47_s20  ;;  %s71_s23 = int_to_ptr.hbm [resolvable:$true] %s70_s23 }
   0xd   :  { %50 = dma.hbm_to_vmem [thread:$0]  %s46_s17, 32, %s48_s20, [#allocation6]  }
   0xe   :  { %s1785_s0 = smov [#allocation10]   ;;  %s1786_s25 = smov 64  }
   0xf   :  { %s72_s24 = sshll.u32 %s1785_s0, 4  ;;  %s1787_s26 = smov 4   ;;  %s73_s24 = int_to_ptr.vmem [resolvable:$true] %s72_s24 }
  0x10   :  { %78 = dma.hbm_to_vmem [thread:$0]  %s71_s23, 2048, %s73_s24, [#allocation9], %s1786_s25, %s1786_s25, %s1787_s26  }
  0x11   :  { %1771 = dma.done.wait [#allocation3], 256  }
  0x12   :  { %1772 = vsyncadd [#allocation3], 4294967040 }
  0x13   :  { %1773 = dma.done.wait [#allocation6], 8224  }
  0x14   :  { %1774 = vsyncadd [#allocation6], 4294959072 }
  0x15   :  { %1775 = dma.done.wait [#allocation9], 6144  }
  0x16   :  { %1776 = vsyncadd [#allocation9], 4294961152  ;;  %v1110_v0 = vld [vmem:[#allocation5 + $0x70] sm:$0xf]  ;;  %v1515_v1 = vld [vmem:[#allocation5 + $0x74] sm:$0xf0] }
  0x17   :  { %v1174_v2 = vld [vmem:[#allocation5 + $0xf0] sm:$0xf]  ;;  %v1111_v3 = vor.u32 %v1515_v1, %v1110_v0  ;;  %v1531_v4 = vld [vmem:[#allocation5 + $0xf4] sm:$0xf0]  ;;  %v1102_v11 = vld [vmem:[#allocation5 + $0x60] sm:$0xf] }
  0x18   :  { %v1238_v5 = vld [vmem:[#allocation5 + $0x170] sm:$0xf]  ;;  %v1547_v6 = vld [vmem:[#allocation5 + $0x174] sm:$0xf0]  ;;  %v1175_v7 = vor.u32 %v1531_v4, %v1174_v2  ;;  %v1513_v13 = vld [vmem:[#allocation5 + $0x64] sm:$0xf0] }
  0x19   :  { %v1239_v8 = vor.u32 %v1547_v6, %v1238_v5  ;;  %v1302_v9 = vld [vmem:[#allocation5 + $0x1f0] sm:$0xf]  ;;  %v1563_v10 = vld [vmem:[#allocation5 + $0x1f4] sm:$0xf0]  ;;  %507 = vmatpush.bf16.msra.mxu0 %v1111_v3  ;;  %v1166_v14 = vld [vmem:[#allocation5 + $0xe0] sm:$0xf]  ;;  %v1103_v16 = vor.u32 %v1513_v13, %v1102_v11 }
  0x1a   :  { %v1303_v12 = vor.u32 %v1563_v10, %v1302_v9  ;;  %v1529_v15 = vld [vmem:[#allocation5 + $0xe4] sm:$0xf0]  ;;  %520 = vmatpush.bf16.msra.mxu1 %v1175_v7  ;;  %v1230_v18 = vld [vmem:[#allocation5 + $0x160] sm:$0xf]  ;;  %v1094_v23 = vld [vmem:[#allocation5 + $0x50] sm:$0xf] }
  0x1b   :  { %533 = vmatpush.bf16.msra.mxu2 %v1239_v8  ;;  %v1167_v17 = vor.u32 %v1529_v15, %v1166_v14  ;;  %v1545_v19 = vld [vmem:[#allocation5 + $0x164] sm:$0xf0]  ;;  %v1294_v20 = vld [vmem:[#allocation5 + $0x1e0] sm:$0xf]  ;;  %v1511_v24 = vld [vmem:[#allocation5 + $0x54] sm:$0xf0] }
  0x1c   :  { %546 = vmatpush.bf16.msra.mxu3 %v1303_v12  ;;  %v1231_v21 = vor.u32 %v1545_v19, %v1230_v18  ;;  %v1561_v22 = vld [vmem:[#allocation5 + $0x1e4] sm:$0xf0]  ;;  %v1158_v26 = vld [vmem:[#allocation5 + $0xd0] sm:$0xf]  ;;  %v1527_v27 = vld [vmem:[#allocation5 + $0xd4] sm:$0xf0]  ;;  %v1095_v29 = vor.u32 %v1511_v24, %v1094_v23 }
  0x1d   :  { %v1295_v25 = vor.u32 %v1561_v22, %v1294_v20  ;;  %v1222_v28 = vld [vmem:[#allocation5 + $0x150] sm:$0xf]  ;;  %508 = vmatpush.bf16.msra.mxu0 %v1103_v16  ;;  %v1543_v30 = vld [vmem:[#allocation5 + $0x154] sm:$0xf0]  ;;  %v1159_v33 = vor.u32 %v1527_v27, %v1158_v26  ;;  %v1086_v35 = vld [vmem:[#allocation5 + $0x40] sm:$0xf] }
  0x1e   :  { %v1286_v31 = vld [vmem:[#allocation5 + $0x1d0] sm:$0xf]  ;;  %v1559_v32 = vld [vmem:[#allocation5 + $0x1d4] sm:$0xf0]  ;;  %521 = vmatpush.bf16.msra.mxu1 %v1167_v17  ;;  %v1223_v34 = vor.u32 %v1543_v30, %v1222_v28  ;;  %v1509_v36 = vld [vmem:[#allocation5 + $0x44] sm:$0xf0] }
  0x1f   :  { %534 = vmatpush.bf16.msra.mxu2 %v1231_v21  ;;  %v1150_v37 = vld [vmem:[#allocation5 + $0xc0] sm:$0xf]  ;;  %v1287_v38 = vor.u32 %v1559_v32, %v1286_v31  ;;  %v1525_v39 = vld [vmem:[#allocation5 + $0xc4] sm:$0xf0]  ;;  %v1087_v44 = vor.u32 %v1509_v36, %v1086_v35  ;;  %v1078_v47 = vld [vmem:[#allocation5 + $0x30] sm:$0xf] }
  0x20   :  { %547 = vmatpush.bf16.msra.mxu3 %v1295_v25  ;;  %v1214_v40 = vld [vmem:[#allocation5 + $0x140] sm:$0xf]  ;;  %v1541_v41 = vld [vmem:[#allocation5 + $0x144] sm:$0xf0]  ;;  %v1151_v45 = vor.u32 %v1525_v39, %v1150_v37  ;;  %v1507_v48 = vld [vmem:[#allocation5 + $0x34] sm:$0xf0] }
  0x21   :  { %v1278_v42 = vld [vmem:[#allocation5 + $0x1c0] sm:$0xf]  ;;  %v1557_v43 = vld [vmem:[#allocation5 + $0x1c4] sm:$0xf0]  ;;  %509 = vmatpush.bf16.msra.mxu0 %v1095_v29  ;;  %v1215_v46 = vor.u32 %v1541_v41, %v1214_v40  ;;  %v1142_v49 = vld [vmem:[#allocation5 + $0xb0] sm:$0xf]  ;;  %v1079_v56 = vor.u32 %v1507_v48, %v1078_v47 }
  0x22   :  { %522 = vmatpush.bf16.msra.mxu1 %v1159_v33  ;;  %v1279_v50 = vor.u32 %v1557_v43, %v1278_v42  ;;  %v1523_v51 = vld [vmem:[#allocation5 + $0xb4] sm:$0xf0]  ;;  %v1206_v52 = vld [vmem:[#allocation5 + $0x130] sm:$0xf]  ;;  %v1070_v59 = vld [vmem:[#allocation5 + $0x20] sm:$0xf] }
  0x23   :  { %535 = vmatpush.bf16.msra.mxu2 %v1223_v34  ;;  %v1539_v53 = vld [vmem:[#allocation5 + $0x134] sm:$0xf0]  ;;  %v1270_v54 = vld [vmem:[#allocation5 + $0x1b0] sm:$0xf]  ;;  %v1143_v57 = vor.u32 %v1523_v51, %v1142_v49  ;;  %v1505_v60 = vld [vmem:[#allocation5 + $0x24] sm:$0xf0] }
  0x24   :  { %548 = vmatpush.bf16.msra.mxu3 %v1287_v38  ;;  %v1555_v55 = vld [vmem:[#allocation5 + $0x1b4] sm:$0xf0]  ;;  %v1207_v58 = vor.u32 %v1539_v53, %v1206_v52  ;;  %v1134_v61 = vld [vmem:[#allocation5 + $0xa0] sm:$0xf]  ;;  %v1521_v63 = vld [vmem:[#allocation5 + $0xa4] sm:$0xf0]  ;;  %v1071_v4 = vor.u32 %v1505_v60, %v1070_v59 }
  0x25   :  { %510 = vmatpush.bf16.msra.mxu0 %v1087_v44  ;;  %v1271_v62 = vor.u32 %v1555_v55, %v1270_v54  ;;  %v1198_v0 = vld [vmem:[#allocation5 + $0x120] sm:$0xf]  ;;  %v1537_v1 = vld [vmem:[#allocation5 + $0x124] sm:$0xf0]  ;;  %v1135_v5 = vor.u32 %v1521_v63, %v1134_v61  ;;  %v1062_v7 = vld [vmem:[#allocation5 + $0x10] sm:$0xf] }
  0x26   :  { %523 = vmatpush.bf16.msra.mxu1 %v1151_v45  ;;  %v1262_v2 = vld [vmem:[#allocation5 + $0x1a0] sm:$0xf]  ;;  %v1553_v3 = vld [vmem:[#allocation5 + $0x1a4] sm:$0xf0]  ;;  %v1199_v6 = vor.u32 %v1537_v1, %v1198_v0  ;;  %v1503_v8 = vld [vmem:[#allocation5 + $0x14] sm:$0xf0] }
  0x27   :  { %536 = vmatpush.bf16.msra.mxu2 %v1215_v46  ;;  %v1126_v9 = vld [vmem:[#allocation5 + $0x90] sm:$0xf]  ;;  %v1263_v10 = vor.u32 %v1553_v3, %v1262_v2  ;;  %v1519_v11 = vld [vmem:[#allocation5 + $0x94] sm:$0xf0]  ;;  %v1063_v16 = vor.u32 %v1503_v8, %v1062_v7  ;;  %v1054_v17 = vld [vmem:[#allocation5] sm:$0xf] }
  0x28   :  { %549 = vmatpush.bf16.msra.mxu3 %v1279_v50  ;;  %v1190_v12 = vld [vmem:[#allocation5 + $0x110] sm:$0xf]  ;;  %v1535_v13 = vld [vmem:[#allocation5 + $0x114] sm:$0xf0]  ;;  %v1501_v18 = vld [vmem:[#allocation5 + $0x4] sm:$0xf0]  ;;  %v1127_v20 = vor.u32 %v1519_v11, %v1126_v9 }
  0x29   :  { %511 = vmatpush.bf16.msra.mxu0 %v1079_v56  ;;  %v1254_v14 = vld [vmem:[#allocation5 + $0x190] sm:$0xf]  ;;  %v1551_v15 = vld [vmem:[#allocation5 + $0x194] sm:$0xf0]  ;;  %v1118_v19 = vld [vmem:[#allocation5 + $0x80] sm:$0xf]  ;;  %v1191_v21 = vor.u32 %v1535_v13, %v1190_v12  ;;  %v1055_v32 = vor.u32 %v1501_v18, %v1054_v17 }
  0x2a   :  { %524 = vmatpush.bf16.msra.mxu1 %v1143_v57  ;;  %v1517_v22 = vld [vmem:[#allocation5 + $0x84] sm:$0xf0]  ;;  %v1182_v23 = vld [vmem:[#allocation5 + $0x100] sm:$0xf]  ;;  %v1255_v25 = vor.u32 %v1551_v15, %v1254_v14  ;;  %v1514_v28 = vld [vmem:[#allocation5 + $0x74] sm:$0xf] }
  0x2b   :  { %537 = vmatpush.bf16.msra.mxu2 %v1207_v58  ;;  %v1533_v24 = vld [vmem:[#allocation5 + $0x104] sm:$0xf0]  ;;  %v1246_v26 = vld [vmem:[#allocation5 + $0x180] sm:$0xf]  ;;  %v1112_v29 = vld [vmem:[#allocation5 + $0x78] sm:$0xf0]  ;;  %v1119_v37 = vor.u32 %v1517_v22, %v1118_v19 }
  0x2c   :  { %550 = vmatpush.bf16.msra.mxu3 %v1271_v62  ;;  %v1549_v27 = vld [vmem:[#allocation5 + $0x184] sm:$0xf0]  ;;  %v1530_v30 = vld [vmem:[#allocation5 + $0xf4] sm:$0xf]  ;;  %v102_v31 = vld [vmem:[#allocation2 + $0x8] sm:$0xff]  ;;  %v1183_v38 = vor.u32 %v1533_v24, %v1182_v23  ;;  %v1115_v43 = vor.u32 %v1514_v28, %v1112_v29  ;;  %s1040_s9 = sshll.u32 %s1876_s7, 4  ;;  %s1041_s9 = int_to_ptr.hbm [resolvable:$true] %s1040_s9 }
  0x2d   :  { %512 = vmatpush.bf16.msra.mxu0 %v1071_v4  ;;  %v1176_v33 = vld [vmem:[#allocation5 + $0xf8] sm:$0xf0]  ;;  %v1546_v34 = vld [vmem:[#allocation5 + $0x174] sm:$0xf]  ;;  %v177_v36 = vunpack.c.l.b16 %v102_v31  ;;  %v178_v41 = vunpack.c.h.b16 %v102_v31  ;;  %v1247_v42 = vor.u32 %v1549_v27, %v1246_v26  ;;  %v1512_v47 = vld [vmem:[#allocation5 + $0x64] sm:$0xf] }
  0x2e   :  { %525 = vmatpush.bf16.msra.mxu1 %v1135_v5  ;;  %v1240_v35 = vld [vmem:[#allocation5 + $0x178] sm:$0xf0]  ;;  %v1562_v39 = vld [vmem:[#allocation5 + $0x1f4] sm:$0xf]  ;;  %v1179_v45 = vor.u32 %v1530_v30, %v1176_v33  ;;  %v1104_v48 = vld [vmem:[#allocation5 + $0x68] sm:$0xf0] }
  0x2f   :  { %538 = vmatpush.bf16.msra.mxu2 %v1199_v6  ;;  %v1304_v40 = vld [vmem:[#allocation5 + $0x1f8] sm:$0xf0]  ;;  %v101_v44 = vld [vmem:[#allocation2] sm:$0xff]  ;;  %v1243_v46 = vor.u32 %v1546_v34, %v1240_v35  ;;  %v1528_v49 = vld [vmem:[#allocation5 + $0xe4] sm:$0xf]  ;;  %v1844_v56 = vpack.c.b16 %v177_v36, %v177_v36  ;;  %v1848_v60 = vpack.c.b16 %v178_v41, %v178_v41  ;;  %v1107_v61 = vor.u32 %v1512_v47, %v1104_v48 }
  0x30   :  { %551 = vmatpush.bf16.msra.mxu3 %v1263_v10  ;;  %v175_v50 = vunpack.c.l.b16 %v101_v44  ;;  %v176_v51 = vunpack.c.h.b16 %v101_v44  ;;  %v1307_v52 = vor.u32 %v1562_v39, %v1304_v40  ;;  %v1168_v53 = vld [vmem:[#allocation5 + $0xe8] sm:$0xf0]  ;;  %v1544_v54 = vld [vmem:[#allocation5 + $0x164] sm:$0xf]  ;;  %v1510_v1 = vld [vmem:[#allocation5 + $0x54] sm:$0xf] }
  0x31   :  { %513 = vmatpush.bf16.msra.mxu0 %v1063_v16  ;;  %v1232_v55 = vld [vmem:[#allocation5 + $0x168] sm:$0xf0]  ;;  %v1560_v57 = vld [vmem:[#allocation5 + $0x1e4] sm:$0xf]  ;;  %v1171_v63 = vor.u32 %v1528_v49, %v1168_v53  ;;  %v1096_v2 = vld [vmem:[#allocation5 + $0x58] sm:$0xf0] }
  0x32   :  { %526 = vmatpush.bf16.msra.mxu1 %v1127_v20  ;;  %v1296_v58 = vld [vmem:[#allocation5 + $0x1e8] sm:$0xf0]  ;;  %v1846_v59 = vpack.c.b16 %v175_v50, %v175_v50  ;;  %v1850_v62 = vpack.c.b16 %v176_v51, %v176_v51  ;;  %v1235_v0 = vor.u32 %v1544_v54, %v1232_v55  ;;  %v1526_v3 = vld [vmem:[#allocation5 + $0xd4] sm:$0xf]  ;;  %v1160_v5 = vld [vmem:[#allocation5 + $0xd8] sm:$0xf0]  ;;  %v1099_v10 = vor.u32 %v1510_v1, %v1096_v2 }
  0x33   :  { %539 = vmatpush.bf16.msra.mxu2 %v1191_v21  ;;  %v1299_v4 = vor.u32 %v1560_v57, %v1296_v58  ;;  %v1542_v6 = vld [vmem:[#allocation5 + $0x154] sm:$0xf]  ;;  %v1224_v7 = vld [vmem:[#allocation5 + $0x158] sm:$0xf0]  ;;  %v1163_v11 = vor.u32 %v1526_v3, %v1160_v5  ;;  %v1508_v13 = vld [vmem:[#allocation5 + $0x44] sm:$0xf] }
  0x34   :  { %552 = vmatpush.bf16.msra.mxu3 %v1255_v25  ;;  %v1558_v8 = vld [vmem:[#allocation5 + $0x1d4] sm:$0xf]  ;;  %v1288_v9 = vld [vmem:[#allocation5 + $0x1d8] sm:$0xf0]  ;;  %v1227_v12 = vor.u32 %v1542_v6, %v1224_v7  ;;  %v1088_v14 = vld [vmem:[#allocation5 + $0x48] sm:$0xf0] }
  0x35   :  { %514 = vmatpush.bf16.msra.mxu0 %v1055_v32  ;;  %v1524_v15 = vld [vmem:[#allocation5 + $0xc4] sm:$0xf]  ;;  %v1291_v16 = vor.u32 %v1558_v8, %v1288_v9  ;;  %v1152_v17 = vld [vmem:[#allocation5 + $0xc8] sm:$0xf0]  ;;  %v1091_v22 = vor.u32 %v1508_v13, %v1088_v14  ;;  %v1506_v25 = vld [vmem:[#allocation5 + $0x34] sm:$0xf] }
  0x36   :  { %527 = vmatpush.bf16.msra.mxu1 %v1119_v37  ;;  %v1540_v18 = vld [vmem:[#allocation5 + $0x144] sm:$0xf]  ;;  %v1216_v19 = vld [vmem:[#allocation5 + $0x148] sm:$0xf0]  ;;  %v1155_v23 = vor.u32 %v1524_v15, %v1152_v17  ;;  %v1080_v26 = vld [vmem:[#allocation5 + $0x38] sm:$0xf0] }
  0x37   :  { %540 = vmatpush.bf16.msra.mxu2 %v1183_v38  ;;  %v1556_v20 = vld [vmem:[#allocation5 + $0x1c4] sm:$0xf]  ;;  %v1280_v21 = vld [vmem:[#allocation5 + $0x1c8] sm:$0xf0]  ;;  %v1219_v24 = vor.u32 %v1540_v18, %v1216_v19  ;;  %v1522_v27 = vld [vmem:[#allocation5 + $0xb4] sm:$0xf]  ;;  %v1083_v34 = vor.u32 %v1506_v25, %v1080_v26 }
  0x38   :  { %553 = vmatpush.bf16.msra.mxu3 %v1247_v42  ;;  %515 = vmatmul.bf16.vlgmr.msra.gmra.mxu0 %v1846_v59  ;;  %v1283_v28 = vor.u32 %v1556_v20, %v1280_v21  ;;  %v1144_v29 = vld [vmem:[#allocation5 + $0xb8] sm:$0xf0]  ;;  %v1538_v30 = vld [vmem:[#allocation5 + $0x134] sm:$0xf]  ;;  %v1504_v37 = vld [vmem:[#allocation5 + $0x24] sm:$0xf] }
  0x39   :  { %559 = vmatpush.bf16.msrb.mxu0 %v1115_v43  ;;  %528 = vmatmul.bf16.vlgmr.msra.gmra.mxu1 %v1850_v62  ;;  %v1208_v31 = vld [vmem:[#allocation5 + $0x138] sm:$0xf0]  ;;  %v1554_v32 = vld [vmem:[#allocation5 + $0x1b4] sm:$0xf]  ;;  %v1147_v35 = vor.u32 %v1522_v27, %v1144_v29  ;;  %v1072_v38 = vld [vmem:[#allocation5 + $0x28] sm:$0xf0] }
  0x3a   :  { %572 = vmatpush.bf16.msrb.mxu1 %v1179_v45  ;;  %541 = vmatmul.bf16.vlgmr.msra.gmra.mxu2 %v1844_v56  ;;  %v1272_v33 = vld [vmem:[#allocation5 + $0x1b8] sm:$0xf0]  ;;  %v1211_v36 = vor.u32 %v1538_v30, %v1208_v31  ;;  %v1520_v39 = vld [vmem:[#allocation5 + $0xa4] sm:$0xf]  ;;  %v1136_v41 = vld [vmem:[#allocation5 + $0xa8] sm:$0xf0] }
  0x3b   :  { %585 = vmatpush.bf16.msrb.mxu2 %v1243_v46  ;;  %554 = vmatmul.bf16.vlgmr.msra.gmra.mxu3 %v1848_v60  ;;  %v1275_v40 = vor.u32 %v1554_v32, %v1272_v33  ;;  %v1536_v42 = vld [vmem:[#allocation5 + $0x124] sm:$0xf]  ;;  %v1200_v43 = vld [vmem:[#allocation5 + $0x128] sm:$0xf0]  ;;  %v1075_v46 = vor.u32 %v1504_v37, %v1072_v38  ;;  %v1502_v47 = vld [vmem:[#allocation5 + $0x14] sm:$0xf]  ;;  %v1139_v48 = vor.u32 %v1520_v39, %v1136_v41 }
  0x3c   :  { %598 = vmatpush.bf16.msrb.mxu3 %v1307_v52  ;;  %v1552_v44 = vld [vmem:[#allocation5 + $0x1a4] sm:$0xf]  ;;  %v1264_v45 = vld [vmem:[#allocation5 + $0x1a8] sm:$0xf0]  ;;  %v1203_v49 = vor.u32 %v1536_v42, %v1200_v43  ;;  %v1064_v50 = vld [vmem:[#allocation5 + $0x18] sm:$0xf0] }
  0x3d   :  { %560 = vmatpush.bf16.msrb.mxu0 %v1107_v61  ;;  %v1518_v51 = vld [vmem:[#allocation5 + $0x94] sm:$0xf]  ;;  %v1267_v52 = vor.u32 %v1552_v44, %v1264_v45  ;;  %v1128_v53 = vld [vmem:[#allocation5 + $0x98] sm:$0xf0]  ;;  %v1067_v61 = vor.u32 %v1502_v47, %v1064_v50  ;;  %v1056_v2 = vld [vmem:[#allocation5 + $0x8] sm:$0xf0] }
  0x3e   :  { %573 = vmatpush.bf16.msrb.mxu1 %v1171_v63  ;;  %v1534_v54 = vld [vmem:[#allocation5 + $0x114] sm:$0xf]  ;;  %v1192_v55 = vld [vmem:[#allocation5 + $0x118] sm:$0xf0]  ;;  %v1500_v63 = vld [vmem:[#allocation5 + $0x4] sm:$0xf] }
  0x3f   :  { %586 = vmatpush.bf16.msrb.mxu2 %v1235_v0  ;;  %v1550_v57 = vld [vmem:[#allocation5 + $0x194] sm:$0xf]  ;;  %v1256_v58 = vld [vmem:[#allocation5 + $0x198] sm:$0xf0]  ;;  %v1131_v0 = vor.u32 %v1518_v51, %v1128_v53  ;;  %v1195_v1 = vor.u32 %v1534_v54, %v1192_v55  ;;  %v1516_v3 = vld [vmem:[#allocation5 + $0x84] sm:$0xf] }
  0x40   :  { %599 = vmatpush.bf16.msrb.mxu3 %v1299_v4  ;;  %v1120_v4 = vld [vmem:[#allocation5 + $0x88] sm:$0xf0]  ;;  %v1259_v5 = vor.u32 %v1550_v57, %v1256_v58  ;;  %v1532_v6 = vld [vmem:[#allocation5 + $0x104] sm:$0xf]  ;;  %v1578_v13 = vld [vmem:[#allocation8 + $0x74] sm:$0xf] }
  0x41   :  { %561 = vmatpush.bf16.msrb.mxu0 %v1099_v10  ;;  %v1184_v7 = vld [vmem:[#allocation5 + $0x108] sm:$0xf0]  ;;  %v1548_v8 = vld [vmem:[#allocation5 + $0x184] sm:$0xf]  ;;  %v1366_v10 = vld [vmem:[#allocation8 + $0x70] sm:$0xf]  ;;  %v1123_v15 = vor.u32 %v1516_v3, %v1120_v4 }
  0x42   :  { %574 = vmatpush.bf16.msrb.mxu1 %v1163_v11  ;;  %v1248_v9 = vld [vmem:[#allocation5 + $0x188] sm:$0xf0]  ;;  %v1579_v11 = vld [vmem:[#allocation8 + $0x74] sm:$0xf0]  ;;  %v1368_v14 = vld [vmem:[#allocation8 + $0x78] sm:$0xf0] }
  0x43   :  { %587 = vmatpush.bf16.msrb.mxu2 %v1227_v12  ;;  %v1059_v12 = vor.u32 %v1500_v63, %v1056_v2  ;;  %v1251_v17 = vor.u32 %v1548_v8, %v1248_v9  ;;  %v1367_v18 = vor.u32 %v1579_v11, %v1366_v10  ;;  %v1371_v19 = vor.u32 %v1578_v13, %v1368_v14  ;;  %v1358_v20 = vld [vmem:[#allocation8 + $0x60] sm:$0xf]  ;;  %v1577_v21 = vld [vmem:[#allocation8 + $0x64] sm:$0xf0]  ;;  %v1350_v26 = vld [vmem:[#allocation8 + $0x50] sm:$0xf] }
  0x44   :  { %600 = vmatpush.bf16.msrb.mxu3 %v1291_v16  ;;  %v1187_v16 = vor.u32 %v1532_v6, %v1184_v7  ;;  %v1575_v27 = vld [vmem:[#allocation8 + $0x54] sm:$0xf0]  ;;  %v1352_v29 = vld [vmem:[#allocation8 + $0x58] sm:$0xf0]  ;;  %v1342_v32 = vld [vmem:[#allocation8 + $0x40] sm:$0xf] }
  0x45   :  { %562 = vmatpush.bf16.msrb.mxu0 %v1091_v22  ;;  %v1576_v22 = vld [vmem:[#allocation8 + $0x64] sm:$0xf]  ;;  %v1351_v30 = vor.u32 %v1575_v27, %v1350_v26  ;;  %v1573_v33 = vld [vmem:[#allocation8 + $0x44] sm:$0xf0]  ;;  %v1334_v37 = vld [vmem:[#allocation8 + $0x30] sm:$0xf] }
  0x46   :  { %575 = vmatpush.bf16.msrb.mxu1 %v1155_v23  ;;  %v1360_v23 = vld [vmem:[#allocation8 + $0x68] sm:$0xf0]  ;;  %v1570_v38 = vld [vmem:[#allocation8 + $0x34] sm:$0xf]  ;;  %v1569_v41 = vld [vmem:[#allocation8 + $0x24] sm:$0xf0] }
  0x47   :  { %588 = vmatpush.bf16.msrb.mxu2 %v1219_v24  ;;  %v1359_v24 = vor.u32 %v1577_v21, %v1358_v20  ;;  %v1363_v25 = vor.u32 %v1576_v22, %v1360_v23  ;;  %v1568_v42 = vld [vmem:[#allocation8 + $0x24] sm:$0xf]  ;;  %v1328_v44 = vld [vmem:[#allocation8 + $0x28] sm:$0xf0]  ;;  %v1567_v47 = vld [vmem:[#allocation8 + $0x14] sm:$0xf0] }
  0x48   :  { %601 = vmatpush.bf16.msrb.mxu3 %v1283_v28  ;;  %v1574_v28 = vld [vmem:[#allocation8 + $0x54] sm:$0xf]  ;;  %v1331_v45 = vor.u32 %v1568_v42, %v1328_v44  ;;  %v1595_v50 = vld [vmem:[#allocation8 + $0xf4] sm:$0xf0]  ;;  %v1432_v57 = vld [vmem:[#allocation8 + $0xf8] sm:$0xf0] }
  0x49   :  { %563 = vmatpush.bf16.msrb.mxu0 %v1083_v34  ;;  %v1355_v31 = vor.u32 %v1574_v28, %v1352_v29  ;;  %v1572_v34 = vld [vmem:[#allocation8 + $0x44] sm:$0xf]  ;;  %v1566_v51 = vld [vmem:[#allocation8 + $0x14] sm:$0xf]  ;;  %v1310_v58 = vld [vmem:[#allocation8] sm:$0xf] }
  0x4a   :  { %576 = vmatpush.bf16.msrb.mxu1 %v1147_v35  ;;  %v1343_v35 = vor.u32 %v1573_v33, %v1342_v32  ;;  %v1594_v55 = vld [vmem:[#allocation8 + $0xf4] sm:$0xf]  ;;  %v1565_v63 = vld [vmem:[#allocation8 + $0x4] sm:$0xf0]  ;;  %v1564_v4 = vld [vmem:[#allocation8 + $0x4] sm:$0xf] }
  0x4b   :  { %589 = vmatpush.bf16.msrb.mxu2 %v1211_v36  ;;  %v1311_v2 = vor.u32 %v1565_v63, %v1310_v58  ;;  %v1592_v6 = vld [vmem:[#allocation8 + $0xe4] sm:$0xf]  ;;  %v1424_v8 = vld [vmem:[#allocation8 + $0xe8] sm:$0xf0]  ;;  %v1414_v9 = vld [vmem:[#allocation8 + $0xd0] sm:$0xf] }
  0x4c   :  { %602 = vmatpush.bf16.msrb.mxu3 %v1275_v40  ;;  %v1326_v40 = vld [vmem:[#allocation8 + $0x20] sm:$0xf]  ;;  %v1591_v10 = vld [vmem:[#allocation8 + $0xd4] sm:$0xf0]  ;;  %v1427_v11 = vor.u32 %v1592_v6, %v1424_v8  ;;  %v1416_v13 = vld [vmem:[#allocation8 + $0xd8] sm:$0xf0] }
  0x4d   :  { %564 = vmatpush.bf16.msrb.mxu0 %v1075_v46  ;;  %v1327_v43 = vor.u32 %v1569_v41, %v1326_v40  ;;  %v1318_v46 = vld [vmem:[#allocation8 + $0x10] sm:$0xf]  ;;  %v1415_v14 = vor.u32 %v1591_v10, %v1414_v9  ;;  %v167_v22 = vld [vmem:[#allocation7] sm:$0x3]  ;;  %v1584_v32 = vld [vmem:[#allocation8 + $0xa4] sm:$0xf] }
  0x4e   :  { %577 = vmatpush.bf16.msrb.mxu1 %v1139_v48  ;;  %v1430_v48 = vld [vmem:[#allocation8 + $0xf0] sm:$0xf]  ;;  %v1400_v27 = vld [vmem:[#allocation8 + $0xb8] sm:$0xf0]  ;;  %v169_v28 = vperm.slane %v167_v22, 0 }
  0x4f   :  { %590 = vmatpush.bf16.msrb.mxu2 %v1203_v49  ;;  %v1319_v49 = vor.u32 %v1567_v47, %v1318_v46  ;;  %v1431_v53 = vor.u32 %v1595_v50, %v1430_v48  ;;  %v1398_v23 = vld [vmem:[#allocation8 + $0xb0] sm:$0xf]  ;;  %v1384_v40 = vld [vmem:[#allocation8 + $0x98] sm:$0xf0]  ;;  %v1581_v46 = vld [vmem:[#allocation8 + $0x84] sm:$0xf0] }
  0x50   :  { %603 = vmatpush.bf16.msrb.mxu3 %v1267_v52  ;;  %v1320_v52 = vld [vmem:[#allocation8 + $0x18] sm:$0xf0]  ;;  %v1580_v47 = vld [vmem:[#allocation8 + $0x84] sm:$0xf] }
  0x51   :  { %565 = vmatpush.bf16.msrb.mxu0 %v1067_v61  ;;  %v1323_v54 = vor.u32 %v1566_v51, %v1320_v52  ;;  %v1435_v61 = vor.u32 %v1594_v55, %v1432_v57  ;;  %v1376_v51 = vld [vmem:[#allocation8 + $0x88] sm:$0xf0] }
  0x52   :  { %578 = vmatpush.bf16.msrb.mxu1 %v1131_v0  ;;  %v1422_v0 = vld [vmem:[#allocation8 + $0xe0] sm:$0xf] }
  0x53   :  { %591 = vmatpush.bf16.msrb.mxu2 %v1195_v1  ;;  %v1593_v1 = vld [vmem:[#allocation8 + $0xe4] sm:$0xf0] }
  0x54   :  { %604 = vmatpush.bf16.msrb.mxu3 %v1259_v5  ;;  %v1423_v3 = vor.u32 %v1593_v1, %v1422_v0  ;;  %v1312_v5 = vld [vmem:[#allocation8 + $0x8] sm:$0xf0] }
  0x55   :  { %566 = vmatpush.bf16.msrb.mxu0 %v1059_v12  ;;  %v1315_v7 = vor.u32 %v1564_v4, %v1312_v5  ;;  %v1590_v12 = vld [vmem:[#allocation8 + $0xd4] sm:$0xf] }
  0x56   :  { %579 = vmatpush.bf16.msrb.mxu1 %v1123_v15  ;;  %v1419_v15 = vor.u32 %v1590_v12, %v1416_v13  ;;  %v1603_v13 = vld [vmem:[#allocation10 + $0x38] sm:$0xff] }
  0x57   :  { %592 = vmatpush.bf16.msrb.mxu2 %v1187_v16  ;;  %v1406_v16 = vld [vmem:[#allocation8 + $0xc0] sm:$0xf] }
  0x58   :  { %605 = vmatpush.bf16.msrb.mxu3 %v1251_v17  ;;  %567 = vmatmul.bf16.vlgmr.msrb.gmra.mxu0 %v1846_v59  ;;  %v1344_v59 = vld [vmem:[#allocation8 + $0x48] sm:$0xf0]  ;;  %v1589_v17 = vld [vmem:[#allocation8 + $0xc4] sm:$0xf0] }
  0x59   :  { %813 = vmatpush.bf16.msra.mxu0 %v1367_v18  ;;  %580 = vmatmul.bf16.vlgmr.msrb.gmra.mxu1 %v1850_v62  ;;  %v1347_v36 = vor.u32 %v1572_v34, %v1344_v59  ;;  %v1571_v62 = vld [vmem:[#allocation8 + $0x34] sm:$0xf0]  ;;  %v1588_v18 = vld [vmem:[#allocation8 + $0xc4] sm:$0xf]  ;;  %v1407_v20 = vor.u32 %v1589_v17, %v1406_v16  ;;  %v1392_v59 = vld [vmem:[#allocation8 + $0xa8] sm:$0xf0] }
  0x5a   :  { %593 = vmatmul.bf16.vlgmr.msrb.gmra.mxu2 %v1844_v56  ;;  %v1336_v56 = vld [vmem:[#allocation8 + $0x38] sm:$0xf0]  ;;  %v1335_v39 = vor.u32 %v1571_v62, %v1334_v37  ;;  %826 = vmatpush.bf16.msra.mxu1 %v1431_v53  ;;  %v1395_v37 = vor.u32 %v1584_v32, %v1392_v59  ;;  %v1379_v53 = vor.u32 %v1580_v47, %v1376_v51  ;;  %v1601_v16 = vld [vmem:[#allocation10 + $0x28] sm:$0xff]  ;;  %v1610_v17 = vld [vmem:[#allocation10 + $0x70] sm:$0xff] }
  0x5b   :  { %839 = vmatpush.bf16.msra.mxu2 %v1371_v19  ;;  %606 = vmatmul.bf16.vlgmr.msrb.gmra.mxu3 %v1848_v60  ;;  %v1339_v60 = vor.u32 %v1570_v38, %v1336_v56  ;;  %v1408_v19 = vld [vmem:[#allocation8 + $0xc8] sm:$0xf0]  ;;  %v1382_v38 = vld [vmem:[#allocation8 + $0x90] sm:$0xf]  ;;  %v1583_v56 = vld [vmem:[#allocation8 + $0x94] sm:$0xf0] }
  0x5c   :  { %852 = vmatpush.bf16.msra.mxu3 %v1435_v61  ;;  %v1411_v21 = vor.u32 %v1588_v18, %v1408_v19  ;;  %v170_v61 = vperm.slane %v167_v22, 1  ;;  %v1600_v18 = vld [vmem:[#allocation10 + $0x20] sm:$0xff]  ;;  %v1609_v19 = vld [vmem:[#allocation10 + $0x68] sm:$0xff]  ;;  %v1598_v22 = vld [vmem:[#allocation10 + $0x10] sm:$0xff] }
  0x5d   :  { %814 = vmatpush.bf16.msra.mxu0 %v1359_v24  ;;  %v1587_v24 = vld [vmem:[#allocation8 + $0xb4] sm:$0xf0] }
  0x5e   :  { %827 = vmatpush.bf16.msra.mxu1 %v1423_v3  ;;  %v1399_v26 = vor.u32 %v1587_v24, %v1398_v23  ;;  %v1607_v23 = vld [vmem:[#allocation10 + $0x58] sm:$0xff]  ;;  %v1597_v24 = vld [vmem:[#allocation10 + $0x8] sm:$0xff] }
  0x5f   :  { %840 = vmatpush.bf16.msra.mxu2 %v1363_v25  ;;  %v1586_v25 = vld [vmem:[#allocation8 + $0xb4] sm:$0xf] }
  0x60   :  { %853 = vmatpush.bf16.msra.mxu3 %v1427_v11  ;;  %v1403_v29 = vor.u32 %v1586_v25, %v1400_v27  ;;  %v1606_v25 = vld [vmem:[#allocation10 + $0x50] sm:$0xff]  ;;  %v1596_v27 = vld [vmem:[#allocation10] sm:$0xff] }
  0x61   :  { %815 = vmatpush.bf16.msra.mxu0 %v1351_v30  ;;  %v1390_v30 = vld [vmem:[#allocation8 + $0xa0] sm:$0xf] }
  0x62   :  { %828 = vmatpush.bf16.msra.mxu1 %v1415_v14  ;;  %v1602_v14 = vld [vmem:[#allocation10 + $0x30] sm:$0xff] }
  0x63   :  { %841 = vmatpush.bf16.msra.mxu2 %v1355_v31  ;;  %v1585_v31 = vld [vmem:[#allocation8 + $0xa4] sm:$0xf0] }
  0x64   :  { %854 = vmatpush.bf16.msra.mxu3 %v1419_v15  ;;  %v1391_v34 = vor.u32 %v1585_v31, %v1390_v30  ;;  %v1611_v15 = vld [vmem:[#allocation10 + $0x78] sm:$0xff]  ;;  %v1604_v30 = vld [vmem:[#allocation10 + $0x40] sm:$0xff] }
  0x65   :  { %816 = vmatpush.bf16.msra.mxu0 %v1343_v35 }
  0x66   :  { %829 = vmatpush.bf16.msra.mxu1 %v1407_v20  ;;  %v1599_v20 = vld [vmem:[#allocation10 + $0x18] sm:$0xff] }
  0x67   :  { %842 = vmatpush.bf16.msra.mxu2 %v1347_v36 }
  0x68   :  { %855 = vmatpush.bf16.msra.mxu3 %v1411_v21  ;;  %v1608_v21 = vld [vmem:[#allocation10 + $0x60] sm:$0xff] }
  0x69   :  { %817 = vmatpush.bf16.msra.mxu0 %v1335_v39  ;;  %v1582_v39 = vld [vmem:[#allocation8 + $0x94] sm:$0xf] }
  0x6a   :  { %830 = vmatpush.bf16.msra.mxu1 %v1399_v26  ;;  %v1387_v42 = vor.u32 %v1582_v39, %v1384_v40 }
  0x6b   :  { %843 = vmatpush.bf16.msra.mxu2 %v1339_v60  ;;  %v1383_v60 = vor.u32 %v1583_v56, %v1382_v38 }
  0x6c   :  { %856 = vmatpush.bf16.msra.mxu3 %v1403_v29 }
  0x6d   :  { %818 = vmatpush.bf16.msra.mxu0 %v1327_v43 }
  0x6e   :  { %831 = vmatpush.bf16.msra.mxu1 %v1391_v34 }
  0x6f   :  { %844 = vmatpush.bf16.msra.mxu2 %v1331_v45  ;;  %v1374_v45 = vld [vmem:[#allocation8 + $0x80] sm:$0xf] }
  0x70   :  { %857 = vmatpush.bf16.msra.mxu3 %v1395_v37  ;;  %v1375_v50 = vor.u32 %v1581_v46, %v1374_v45  ;;  %v1622_v45 = vld [vmem:[%s1875_s6] ss:$0 sm:$0xff] }
  0x71   :  { %819 = vmatpush.bf16.msra.mxu0 %v1319_v49 }
  0x72   :  { %832 = vmatpush.bf16.msra.mxu1 %v1383_v60 }
  0x73   :  { %845 = vmatpush.bf16.msra.mxu2 %v1323_v54 }
  0x74   :  { %858 = vmatpush.bf16.msra.mxu3 %v1387_v42 }
  0x75   :  { %820 = vmatpush.bf16.msra.mxu0 %v1311_v2 }
  0x76   :  { %833 = vmatpush.bf16.msra.mxu1 %v1375_v50 }
  0x77   :  { %846 = vmatpush.bf16.msra.mxu2 %v1315_v7 }
  0x78   :  { %859 = vmatpush.bf16.msra.mxu3 %v1379_v53 }
  0x79   :  { %1001 = vmatpush.bf16.msrb.mxu0 %v1603_v13 }
  0x7a   :  { %1014 = vmatpush.bf16.msrb.mxu1 %v1611_v15 }
  0x7d   :  { %1002 = vmatpush.bf16.msrb.mxu0 %v1602_v14 }
  0x7e   :  { %1015 = vmatpush.bf16.msrb.mxu1 %v1610_v17 }
  0x81   :  { %1003 = vmatpush.bf16.msrb.mxu0 %v1601_v16 }
  0x82   :  { %1016 = vmatpush.bf16.msrb.mxu1 %v1609_v19 }
  0x85   :  { %1004 = vmatpush.bf16.msrb.mxu0 %v1600_v18 }
  0x86   :  { %1017 = vmatpush.bf16.msrb.mxu1 %v1608_v21 }
  0x89   :  { %1005 = vmatpush.bf16.msrb.mxu0 %v1599_v20 }
  0x8a   :  { %1018 = vmatpush.bf16.msrb.mxu1 %v1607_v23 }
  0x8d   :  { %1006 = vmatpush.bf16.msrb.mxu0 %v1598_v22 }
  0x8e   :  { %1019 = vmatpush.bf16.msrb.mxu1 %v1606_v25 }
  0x91   :  { %1007 = vmatpush.bf16.msrb.mxu0 %v1597_v24 }
  0x95   :  { %1008 = vmatpush.bf16.msrb.mxu0 %v1596_v27 }
  0xb5   :  { %v516_v33 = vpop.f32.mrf.mxu0 }
  0xb6   :  { %v517_v35 = vadd.f32 %v516_v33, %v169_v28  ;;  %v529_v36 = vpop.f32.mrf.mxu1  ;;  %v1605_v28 = vld [vmem:[#allocation10 + $0x48] sm:$0xff] }
  0xb7   :  { %1020 = vmatpush.bf16.msrb.mxu1 %v1605_v28  ;;  %v647_v33 = vld [vmem:[%s1873_s4] sm:$0x3]  ;;  %s1788_s4 = smov [#allocation11]  }
  0xb8   :  { %v530_v62 = vadd.f32 %v529_v36, %v517_v35  ;;  %v649_v34 = vperm.slane %v647_v33, 0  ;;  %v650_v36 = vperm.slane %v647_v33, 1  ;;  %s1038_s29 = sshll.u32 %s1788_s4, 4  ;;  %s1039_s29 = int_to_ptr.vmem [resolvable:$true] %s1038_s29 }
  0xbb   :  { %1021 = vmatpush.bf16.msrb.mxu1 %v1604_v30 }
  0xbd   :  { %v542_v41 = vpop.f32.mrf.mxu2  ;;  %v518_v49 = vpop.f32.mrf.mxu0 }
  0xbe   :  { %v543_v43 = vadd.f32 %v542_v41, %v530_v62  ;;  %v555_v44 = vpop.f32.mrf.mxu3  ;;  %v531_v52 = vpop.f32.mrf.mxu1 }
  0xc0   :  { %v556_v48 = vadd.f32 %v555_v44, %v543_v43 }
  0xc2   :  { %v611_v54 = vmax.f32 %v556_v48, 0.0 }
  0xc4   :  { %v613_v55 = vpack.c.bf16 %v611_v54, %v611_v54 }
  0xc5   :  { %v544_v57 = vpop.f32.mrf.mxu2 }
  0xc6   :  { %821 = vmatmul.bf16.vlgmr.msra.gmra.mxu0 %v613_v55  ;;  %847 = vmatmul.bf16.vlgmr.msra.gmra.mxu2 %v613_v55  ;;  %v557_v58 = vpop.f32.mrf.mxu3 }
  0xd5   :  { %v568_v63 = vpop.f32.mrf.mxu0 }
  0xd6   :  { %v569_v0 = vadd.f32 %v568_v63, %v170_v61  ;;  %v581_v1 = vpop.f32.mrf.mxu1 }
  0xd8   :  { %v582_v2 = vadd.f32 %v581_v1, %v569_v0 }
  0xdd   :  { %v594_v3 = vpop.f32.mrf.mxu2  ;;  %v570_v6 = vpop.f32.mrf.mxu0 }
  0xde   :  { %v595_v4 = vadd.f32 %v594_v3, %v582_v2  ;;  %v607_v5 = vpop.f32.mrf.mxu3  ;;  %v583_v7 = vpop.f32.mrf.mxu1 }
  0xe0   :  { %v608_v8 = vadd.f32 %v607_v5, %v595_v4 }
  0xe2   :  { %v612_v9 = vmax.f32 %v608_v8, 0.0 }
  0xe4   :  { %v614_v10 = vpack.c.bf16 %v612_v9, %v612_v9 }
  0xe5   :  { %v596_v11 = vpop.f32.mrf.mxu2 }
  0xe6   :  { %v609_v12 = vpop.f32.mrf.mxu3  ;;  %834 = vmatmul.bf16.vlgmr.msra.gmra.mxu1 %v614_v10  ;;  %860 = vmatmul.bf16.vlgmr.msra.gmra.mxu3 %v614_v10 }
 0x143   :  { %v822_v26 = vpop.f32.mrf.mxu0 }
 0x144   :  { %v823_v59 = vadd.f32 %v822_v26, %v649_v34 }
 0x149   :  { %v848_v29 = vpop.f32.mrf.mxu2 }
 0x14a   :  { %v849_v38 = vadd.f32 %v848_v29, %v650_v36 }
 0x14b   :  { %v824_v31 = vpop.f32.mrf.mxu0 }
 0x151   :  { %v850_v32 = vpop.f32.mrf.mxu2 }
 0x163   :  { %v835_v35 = vpop.f32.mrf.mxu1 }
 0x164   :  { %v836_v37 = vadd.f32 %v835_v35, %v823_v59 }
 0x166   :  { %v865_v62 = vmax.f32 %v836_v37, 0.0 }
 0x168   :  { %v867_v56 = vpack.c.bf16 %v865_v62, %v865_v62 }
 0x169   :  { %v861_v39 = vpop.f32.mrf.mxu3 }
 0x16a   :  { %v862_v60 = vadd.f32 %v861_v39, %v849_v38  ;;  %1009 = vmatmul.bf16.vlgmr.msrb.gmra.mxu0 %v867_v56 }
 0x16b   :  { %v837_v40 = vpop.f32.mrf.mxu1 }
 0x16c   :  { %v866_v41 = vmax.f32 %v862_v60, 0.0 }
 0x16e   :  { %v868_v42 = vpack.c.bf16 %v866_v41, %v866_v41 }
 0x170   :  { %1022 = vmatmul.bf16.vlgmr.msrb.gmra.mxu1 %v868_v42 }
 0x171   :  { %v863_v43 = vpop.f32.mrf.mxu3 }
 0x1e7   :  { %v1010_v44 = vpop.f32.mrf.mxu0 }
 0x1e8   :  { %v1011_v46 = vadd.f32 %v1622_v45, %v1010_v44 }
 0x1ed   :  { %v1023_v47 = vpop.f32.mrf.mxu1 }
 0x1ee   :  { %v1024_v48 = vadd.f32 %v1023_v47, %v1011_v46 }
 0x1ef   :  { %v1012_v49 = vpop.f32.mrf.mxu0 }
 0x1f0   :  { %v1027_v50 = vsub.f32 0.0, %v1024_v48 }
 0x1f2   :  { %v1028_v51 = vmul.f32 1.442695, %v1027_v50 }
 0x1f4   :  { %1623 = vpow2.f32 %v1028_v51 }
 0x1f5   :  { %v1025_v52 = vpop.f32.mrf.mxu1 }
 0x1fa   :  { %v1624_v53 = vpop.eup %1623 }
 0x1fb   :  { %v1030_v54 = vadd.f32 1.0, %v1624_v53 }
 0x1fd   :  { %1625 = vrcp.f32 %v1030_v54 }
 0x203   :  { %v1626_v55 = vpop.eup %1625 }
 0x204   :  { %1032 = vst [vmem:[#allocation11] sm:$0xff] %v1626_v55 }
 0x205   :  { %1043 = dma.vmem_to_hbm [thread:$0]  %s1039_s29, 128, %s1041_s9, [#allocation4]  }
 0x206   :  { %1777 = dma.done.wait [#allocation4], 128  }
 0x207   :  { %1778 = vsyncadd [#allocation4], 4294967168 }
 0x208   :  { %1048 = vsyncpa [#allocation3], 1 }
 0x209   :  { %1049 = vsyncpa [#allocation6], 1 }
 0x20a   :  { %1050 = vsyncpa [#allocation9], 1 }
 0x20b   :  { %1051 = vsyncpa [#allocation4], 1 }

</bundles_post_ra>
